<compile_context>
chip_gen: v5e
topology: v5e:2x2
jax: 0.10.0
libtpu: 0.0.40
codegen_flags: <defaults>
</compile_context>

<pallas_src>
import jax
import jax.numpy as jnp
from jax.experimental import pallas as pl
from jax.experimental.pallas import tpu as pltpu


def _round_up(x, m):
    return (x + m - 1) // m * m


def _patch_embed_kernel(a_ref, w_ref, scale_ref, shift_ref, o_ref):
    # a_ref:     (TM, K)   bf16 im2col patch rows (K = C*p*p, unpadded)
    # w_ref:     (K,  Np)  bf16 conv weight reshaped (K, N), N zero-padded to Np
    # scale_ref: (1,  Np)  f32  BN scale = gamma / sqrt(var + eps)
    # shift_ref: (1,  Np)  f32  BN shift = beta - mean * scale
    # o_ref:     (TM, Np)  bf16
    acc = jnp.dot(a_ref[...], w_ref[...], preferred_element_type=jnp.float32)
    o_ref[...] = (acc * scale_ref[...] + shift_ref[...]).astype(o_ref.dtype)


def _tile_vmem_bytes(tm, k, np_):
    a_tile = tm * k * 2            # bf16 A tile
    o_tile = tm * np_ * 2          # bf16 out tile
    w_b = k * np_ * 2              # bf16 weight (resident, but count 2 bufs anyway)
    ss_b = 2 * np_ * 4             # f32 scale + shift rows
    acc_b = tm * np_ * 4           # f32 dot result before the bf16 store
    return 2 * (a_tile + o_tile + w_b + ss_b) + acc_b


def _choose_tm(m, k, np_):
    """Pick the M tile: ~2 MiB streamed per grid step, v7x-safe VMEM, >=2 grid steps."""
    bytes_per_row = k * 2 + np_ * 2
    tm = (2 * 1024 * 1024) // bytes_per_row
    tm = max(256, min(4096, (tm // 256) * 256))
    while tm > 256 and _tile_vmem_bytes(tm, k, np_) > 24 * 1024 * 1024:
        tm -= 256
    if m <= tm:
        # Keep at least two grid steps when possible so both v7x TensorCores get work;
        # round to a multiple of 16 (bf16 packs 16 sublanes per vreg).
        tm = _round_up((m + 1) // 2, 16)
    return tm


def patch_embed_forward(x, conv_w, bn_gamma, bn_beta, bn_mean, bn_var,
                        *, patch_size, stride, eps=1e-5):
    """x: [B, C, H, W] NCHW. conv_w: [embed_dim, C, p, p]. Returns NCHW output."""
    assert patch_size == stride, "kernel assumes non-overlapping patches (module defaults)"
    B, C, H, W = x.shape
    N = conv_w.shape[0]
    p = patch_size
    Ho, Wo = H // p, W // p
    M = B * Ho * Wo
    K = C * p * p

    Np = _round_up(N, 128)          # lane-dense, unmasked output stores
    TM = _choose_tm(M, K, Np)
    Mp = _round_up(M, TM)

    # --- glue: im2col in bf16 (one fused cast+transpose pass in XLA), K kept unpadded,
    # K ordered (C, kh, kw) to match the PyTorch OIHW conv weight layout.
    a = x.astype(jnp.bfloat16).reshape(B, C, Ho, p, Wo, p)
    a = a.transpose(0, 2, 4, 1, 3, 5).reshape(M, K)
    if Mp != M:
        a = jnp.pad(a, ((0, Mp - M), (0, 0)))

    # --- glue: weight to (K, Np) bf16; BN scale/shift stay f32 (applied in-kernel).
    w = conv_w.reshape(N, K).T.astype(jnp.bfloat16)
    w = jnp.pad(w, ((0, 0), (0, Np - N)))
    scale = (bn_gamma / jnp.sqrt(bn_var + eps)).astype(jnp.float32)
    shift = (bn_beta - bn_mean * scale).astype(jnp.float32)
    scale_p = jnp.pad(scale, (0, Np - N)).reshape(1, Np)
    shift_p = jnp.pad(shift, (0, Np - N)).reshape(1, Np)

    cost = pl.CostEstimate(
        flops=2 * Mp * K * Np,
        transcendentals=0,
        bytes_accessed=Mp * K * 2 + K * Np * 2 + 2 * Np * 4 + Mp * Np * 2,
    )
    vmem_limit = min(32 * 1024 * 1024,
                     max(8 * 1024 * 1024,
                         _tile_vmem_bytes(TM, K, Np) + 4 * 1024 * 1024))

    out = pl.pallas_call(
        _patch_embed_kernel,
        out_shape=jax.ShapeDtypeStruct((Mp, Np), jnp.bfloat16),
        grid=(Mp // TM,),
        in_specs=[
            pl.BlockSpec((TM, K), lambda i: (i, 0)),
            pl.BlockSpec((K, Np), lambda i: (0, 0)),
            pl.BlockSpec((1, Np), lambda i: (0, 0)),
            pl.BlockSpec((1, Np), lambda i: (0, 0)),
        ],
        out_specs=pl.BlockSpec((TM, Np), lambda i: (i, 0)),
        compiler_params=pltpu.CompilerParams(
            dimension_semantics=("parallel",),
            vmem_limit_bytes=vmem_limit),
        cost_estimate=cost,
    )(a, w, scale_p, shift_p)

    # --- glue: strip padding, back to NCHW [B, N, Ho, Wo]. The transpose reads bf16
    # (half the bytes of the old f32 pass); the cast to the caller dtype fuses into it.
    out = out[:M, :N].reshape(B, Ho, Wo, N).transpose(0, 3, 1, 2).astype(x.dtype)
    return out


def _reference(x, conv_w, bn_gamma, bn_beta, bn_mean, bn_var, *, patch_size, stride, eps=1e-5):
    y = jax.lax.conv_general_dilated(
        x.astype(jnp.float32), conv_w.astype(jnp.float32),
        window_strides=(stride, stride), padding="VALID",
        dimension_numbers=("NCHW", "OIHW", "NCHW"))
    scale = bn_gamma / jnp.sqrt(bn_var + eps)
    shift = bn_beta - bn_mean * scale
    return y * scale[None, :, None, None] + shift[None, :, None, None]


if __name__ == "__main__":
    # Small shapes consistent with the module's forward:
    # PatchEmbed(patch_size=4, stride=4, padding=0, in_chans=4, embed_dim=32)
    B, C, H, W = 2, 4, 16, 16
    patch_size = stride = 4
    embed_dim = 32

    key = jax.random.PRNGKey(0)
    k_x, k_w, k_g, k_b, k_m, k_v = jax.random.split(key, 6)

    x = jax.random.normal(k_x, (B, C, H, W), dtype=jnp.float32)
    # ConvModule with a norm layer uses bias=False on the conv.
    conv_w = jax.random.normal(k_w, (embed_dim, C, patch_size, patch_size),
                               dtype=jnp.float32) * 0.05
    bn_gamma = 1.0 + 0.1 * jax.random.normal(k_g, (embed_dim,), dtype=jnp.float32)
    bn_beta = 0.1 * jax.random.normal(k_b, (embed_dim,), dtype=jnp.float32)
    bn_mean = 0.1 * jax.random.normal(k_m, (embed_dim,), dtype=jnp.float32)
    bn_var = jnp.abs(jax.random.normal(k_v, (embed_dim,), dtype=jnp.float32)) + 0.5

    out = patch_embed_forward(x, conv_w, bn_gamma, bn_beta, bn_mean, bn_var,
                              patch_size=patch_size, stride=stride)
    out = jax.block_until_ready(out)

    ref = _reference(x, conv_w, bn_gamma, bn_beta, bn_mean, bn_var,
                     patch_size=patch_size, stride=stride)
    assert out.shape == (B, embed_dim, H // stride, W // stride), out.shape
    # bf16 activations / bf16 output with f32 accumulation -> relaxed tolerance vs. the
    # f32 conv reference.
    assert jnp.allclose(out, ref, atol=5e-2, rtol=5e-2), "mismatch vs XLA conv reference"

    print("KERNEL_OK")
</pallas_src>

<mosaic_0001>
module attributes {stable_mosaic.version = 11 : i64} {
  func.func @_patch_embed_kernel(%arg0: i32, %arg1: memref<16x64xbf16, #tpu.memory_space<vmem>>, %arg2: memref<64x128xbf16, #tpu.memory_space<vmem>>, %arg3: memref<1x128xf32, #tpu.memory_space<vmem>>, %arg4: memref<1x128xf32, #tpu.memory_space<vmem>>, %arg5: memref<16x128xbf16, #tpu.memory_space<vmem>>) attributes {dimension_semantics = [#tpu.dimension_semantics<parallel>], iteration_bounds = array<i64: 2>, scalar_prefetch = 0 : i64, scratch_operands = 0 : i64, tpu.core_type = #tpu.core_type<tc>, window_params = [{transform_indices = @transform_0, window_bounds = array<i64: 16, 64>}, {pipeline_mode = #tpu.pipeline_mode<synchronous>, transform_indices = @transform_1, window_bounds = array<i64: 64, 128>}, {pipeline_mode = #tpu.pipeline_mode<synchronous>, transform_indices = @transform_2, window_bounds = array<i64: 1, 128>}, {pipeline_mode = #tpu.pipeline_mode<synchronous>, transform_indices = @transform_3, window_bounds = array<i64: 1, 128>}, {transform_indices = @transform_4, window_bounds = array<i64: 16, 128>}]} {
    %c0 = arith.constant 0 : index
    %c0_0 = arith.constant 0 : index
    %0 = vector.load %arg1[%c0, %c0_0] : memref<16x64xbf16, #tpu.memory_space<vmem>>, vector<16x64xbf16>
    %c0_1 = arith.constant 0 : index
    %c0_2 = arith.constant 0 : index
    %1 = vector.load %arg2[%c0_1, %c0_2] : memref<64x128xbf16, #tpu.memory_space<vmem>>, vector<64x128xbf16>
    %cst = arith.constant dense<0.000000e+00> : vector<16x128xf32>
    %2 = tpu.matmul %0, %1, %cst {dimension_numbers = #tpu.dot_dimension_numbers<[1], [0], [0], [1], [0, 0, 1, 1], [], []>} : vector<16x64xbf16>, vector<64x128xbf16>, vector<16x128xf32> -> vector<16x128xf32>
    %c0_3 = arith.constant 0 : index
    %c0_4 = arith.constant 0 : index
    %3 = vector.load %arg3[%c0_3, %c0_4] : memref<1x128xf32, #tpu.memory_space<vmem>>, vector<1x128xf32>
    %4 = vector.broadcast %3 : vector<1x128xf32> to vector<16x128xf32>
    %5 = arith.mulf %2, %4 : vector<16x128xf32>
    %c0_5 = arith.constant 0 : index
    %c0_6 = arith.constant 0 : index
    %6 = vector.load %arg4[%c0_5, %c0_6] : memref<1x128xf32, #tpu.memory_space<vmem>>, vector<1x128xf32>
    %7 = vector.broadcast %6 : vector<1x128xf32> to vector<16x128xf32>
    %8 = arith.addf %5, %7 : vector<16x128xf32>
    %9 = arith.truncf %8 : vector<16x128xf32> to vector<16x128xbf16>
    %c0_7 = arith.constant 0 : index
    %c0_8 = arith.constant 0 : index
    %10 = vector.load %arg5[%c0_7, %c0_8] : memref<16x128xbf16, #tpu.memory_space<vmem>>, vector<16x128xbf16>
    tpu.vector_store %arg5[%c0_7, %c0_8], %9 {strides = array<i32>} : memref<16x128xbf16, #tpu.memory_space<vmem>>, vector<16x128xbf16>,
    return
  }
  func.func @transform_0(%arg0: i32) -> (i32, i32) {
    %c0_i32 = arith.constant 0 : i32
    %c0_i32_0 = arith.constant 0 : i32
    return %arg0, %c0_i32 : i32, i32
  }
  func.func @transform_1(%arg0: i32) -> (i32, i32) {
    %c0_i32 = arith.constant 0 : i32
    %c0_i32_0 = arith.constant 0 : i32
    %c0_i32_1 = arith.constant 0 : i32
    return %c0_i32, %c0_i32_0 : i32, i32
  }
  func.func @transform_2(%arg0: i32) -> (i32, i32) {
    %c0_i32 = arith.constant 0 : i32
    %c0_i32_0 = arith.constant 0 : i32
    %c0_i32_1 = arith.constant 0 : i32
    return %c0_i32, %c0_i32_0 : i32, i32
  }
  func.func @transform_3(%arg0: i32) -> (i32, i32) {
    %c0_i32 = arith.constant 0 : i32
    %c0_i32_0 = arith.constant 0 : i32
    %c0_i32_1 = arith.constant 0 : i32
    return %c0_i32, %c0_i32_0 : i32, i32
  }
  func.func @transform_4(%arg0: i32) -> (i32, i32) {
    %c0_i32 = arith.constant 0 : i32
    %c0_i32_0 = arith.constant 0 : i32
    return %arg0, %c0_i32 : i32, i32
  }
}

</mosaic_0001>

<bundles_post_ra>
// kernel: tpu_custom_call.1
= control target key start
LH: loop header
LB: loop body
LE: loop exit
PB: predicated region body
PF: predicated region fallthrough
CT: control target
= control target key end

     0   :  { %9 = vsyncpa [#allocation3], 0  ;;  %s834_s0 = inlined_call_operand.hbm [shape: bf16[32,64], index: 0, kind: input, shape index: {}]   ;;  %s835_s1 = inlined_call_operand.hbm [shape: bf16[64,128], index: 1, kind: input, shape index: {}]   ;;  %s836_s2 = inlined_call_operand.vmem [shape: f32[1,128], index: 2, kind: input, shape index: {}]   ;;  %s837_s3 = inlined_call_operand.vmem [shape: f32[1,128], index: 3, kind: input, shape index: {}]   ;;  %s838_s4 = inlined_call_operand.hbm [shape: bf16[32,128], index: 4, kind: output, shape index: {}]  }
   0x1   :  { %11 = vsyncpa [#allocation3 + $0x1], 0 }
   0x2   :  { %12 = vsyncpa [#allocation6], 0 }
   0x3   :  { %13 = vsyncpa [#allocation4], 0 }
   0x4   :  { %15 = vsyncpa [#allocation4 + $0x1], 0  ;;  %s684_s15 = smov 0   ;;  %s686_s16 = smov 0  }
   0x5   :  { %s688_s17 = smov 0   ;;  %s690_s18 = smov 0  }
   0x6 LB: > { %s705_s19 = sadd.s32 4294967295, %s652_s18   ;;  %s410_s20 = sadd.s32 4294967294, %s652_s18   ;;  %s652_s18 = sphi %s690_s18, %s848_s18   ;;  %s648_s17 = sphi %s688_s17, %s847_s17   ;;  %s644_s16 = sphi %s686_s16, %s846_s16   ;;  %s640_s15 = sphi %s684_s15, %s845_s15  }
   0x7   : > { %p41_p0 = scmp.ne.s32.totalorder %s644_s16, %s640_s15  ;;  %p42_p1 = scmp.eq.s32.totalorder %s705_s19, 0 }
   0x8   : > { %p128_p2 = scmp.eq.s32.totalorder %s705_s19, 1  ;;  %p134_p3 = scmp.eq.s32.totalorder %s410_s20, 1 }
   0x9   : > { %p714_p4 = por %p42_p1, %p41_p0  ;;  %p411_p5 = scmp.ge.s32.totalorder %s652_s18, 1 }
   0xa   : > { %p719_p6 = por %p134_p3, %p41_p0  ;;  %p141_p7 = scmp.lt.s32.totalorder %s652_s18, 3 }
   0xb   : > { %s152_s25 = sshll.u32 %s835_s1, 4  ;;  %s654_s27 = smov [#allocation5]   ;;  %s153_s25 = int_to_ptr.hbm [resolvable:$true] %s152_s25 }
   0xc   : > { %p727_p8 = pnand %p411_p5, %p141_p7  ;;  %s154_s28 = sshll.u32 %s654_s27, 4  ;;  %s155_s28 = int_to_ptr.vmem [resolvable:$true] %s154_s28 }
   0xd   : > { %s737_s29 = sadd.s32 1, %s652_s18   ;;  %s655_s30 = smov 64  }
   0xe   : > { %p467_p9 = pneg %p727_p8  ;;  %s656_s5 = smov 4  }
   0xf   : > { %s25_s6 = ssub.s32 %s652_s18, %s737_s29  ;;  %s28_s7 = sadd.s32 1, %s648_s17 }
  0x10   : > { %p468_p10 = pnand %p467_p9, %p42_p1  ;;  %p26_p12 = scmp.eq.s32.totalorder %s25_s6, 0 }
  0x11   : > { %p35_p13 = scmp.ne.s32.totalorder %s648_s17, %s644_s16  ;;  %p36_p0 = scmp.eq.s32.totalorder %s652_s18, 0 }
  0x12   : > { %470 = dma.hbm_to_vmem [thread:$0]  (!%p468_p10), %s153_s25, 512, %s155_s28, [#allocation6], %s655_s30, %s655_s30, %s656_s5  }
  0x13   : > { %s749_s8 = scalar_select %p26_p12, %s648_s17, %s28_s7  }
  0x14   : > { %p753_p3 = por %p128_p2, %p35_p13  ;;  %p480_p5 = scmp.lt.s32.totalorder %s652_s18, 2 }
  0x15   : > { %s174_s10 = sand.u32 1, %s648_s17   ;;  %s447_s11 = sshll.u32 %s652_s18, 3 }
  0x16   : > { %p37_p7 = por %p36_p0, %p35_p13  ;;  %s414_s12 = sshll.u32 %s174_s10, 3 }
  0x17   : > { %s183_s20 = scalar_lea.hbm %s834_s0, %s447_s11  ;;  %s178_s24 = scalar_lea.vmem [#allocation2], %s414_s12 }
  0x18   : > { %s184_s23 = sshll.u32 %s183_s20, 4  ;;  %s186_s25 = sshll.u32 %s178_s24, 4  ;;  %s185_s23 = int_to_ptr.hbm [resolvable:$true] %s184_s23  ;;  %s187_s25 = int_to_ptr.vmem [resolvable:$true] %s186_s25 }
  0x19   : > { %p763_p9 = pnand %p480_p5, %p37_p7  ;;  %s175_s28 = scalar_lea.sflag [#allocation3], %s174_s10 }
  0x1a   : > { %s552_s6 = sshra.s32 %s185_s23, 4  ;;  %s559_s12 = scalar_lea.hbm %s834_s0, 16  ;;  %s553_s6 = int_to_ptr.hbm [resolvable:$true] %s552_s6 }
  0x1b   : > { %s554_s7 = scalar_lea.hbm %s553_s6, 8  ;;  %p556_p10 = pneg %p763_p9 }
  0x1c   : > { %p555_p2 = scmp.ne.s32.totalorder %s553_s6, %s554_s7  ;;  %p560_p0 = scmp.lt.s32.totalorder %s553_s6, %s834_s0 }
  0x1d   : > { %p561_p5 = scmp.lt.s32.totalorder %s559_s12, %s554_s7 }
  0x1e   : > { %p557_p12 = pnand %p556_p10, %p555_p2 }
  0x1f   : > { %p562_p7 = por %p561_p5, %p560_p0 }
  0x20   : > { %p558_p13 = pneg %p557_p12 }
  0x22   : > { %p563_p11 = pnand %p562_p7, %p558_p13 }
  0x24   : > { %566 = shalt.err (!%p563_p11)
}
  0x25   : > { %474 = dma.hbm_to_vmem [thread:$0]  (!%p763_p9), %s185_s23, 128, %s187_s25, %s175_s28, %s655_s30, %s655_s30, %s656_s5  }
  0x26   : > { %198 = sbr.rel (%p727_p8) target bundleno = 206 (0xce), region = 36  ;;  %s783_s10 = sand.u32 (!%p727_p8), 1, %s644_s16  }
  0x27   : > { %s418_s24 = sshll.u32 (!%p727_p8), %s783_s10, 3  ;;  %s201_s6 = scalar_lea.sflag (!%p727_p8), [#allocation3], %s783_s10 }
  0x28   : > { %s204_s7 = scalar_lea.vmem (!%p727_p8), [#allocation2], %s418_s24 }
  0x2b   : > { %627 = dma.done.wait (%p714_p4), %s201_s6, 128  }
  0x2c   : > { %629 = vsyncadd (%p714_p4), %s201_s6, 4294967168 }
  0x2d   : > { %631 = dma.done.wait (%p42_p1), [#allocation6], 512  }
  0x2e   : > { %633 = vsyncadd (%p42_p1), [#allocation6], 4294966784  ;;  %v452_v0 = vld [vmem:[#allocation5 + $0x18] sm:$0xff]  ;;  %v451_v1 = vld [vmem:[#allocation5 + $0x10] sm:$0xff]  ;;  %vm277_vm0 = vcmask 523264   ;;  %s453_s30 = sshll.u32 %s705_s19, 3 }
  0x2f   : > { %285 = vmatpush.bf16.msra.mxu0 %v452_v0  ;;  %v450_v2 = vld [vmem:[#allocation5 + $0x8] sm:$0xff]  ;;  %v449_v3 = vld [vmem:[#allocation5] sm:$0xff]  ;;  %v448_v4 = vld [vmem:[%s204_s7] sm:$0xff]  ;;  %s323_s25 = scalar_lea.hbm %s838_s4, %s453_s30  ;;  %s234_s11 = scalar_lea.vmem [#allocation7], %s418_s24 }
  0x30   : > { %v520_v6 = vld [vmem:[%s836_s2] ss:$0 sm:$0xff]  ;;  %s324_s13 = sshll.u32 %s234_s11, 4  ;;  %s326_s12 = sshll.u32 %s323_s25, 4  ;;  %s325_s13 = int_to_ptr.vmem [resolvable:$true] %s324_s13  ;;  %s327_s12 = int_to_ptr.hbm [resolvable:$true] %s326_s12 }
  0x31   : > { %v521_v8 = vld [vmem:[%s837_s3] ss:$0 sm:$0xff]  ;;  %s312_s19 = scalar_lea.sflag [#allocation4], %s783_s10  ;;  %s596_s14 = sshra.s32 %s327_s12, 4  ;;  %s597_s14 = int_to_ptr.hbm [resolvable:$true] %s596_s14 }
  0x32   : > { %s598_s20 = scalar_lea.hbm %s597_s14, 8  ;;  %s602_s24 = scalar_lea.hbm %s838_s4, 16 }
  0x33   : > { %286 = vmatpush.bf16.msra.mxu0 %v451_v1  ;;  %p599_p1 = scmp.ne.s32.totalorder %s597_s14, %s598_s20  ;;  %p603_p11 = scmp.lt.s32.totalorder %s597_s14, %s838_s4 }
  0x34   : > { %p604_p9 = scmp.lt.s32.totalorder %s602_s24, %s598_s20 }
  0x35   : > { %p600_p4 = pnand %p599_p1, %p753_p3 }
  0x36   : > { %p605_p2 = por %p604_p9, %p603_p11 }
  0x37   : > { %287 = vmatpush.bf16.msra.mxu0 %v450_v2  ;;  %p601_p8 = pneg %p600_p4 }
  0x39   : > { %p606_p10 = pnand %p605_p2, %p601_p8 }
  0x3b   : > { %288 = vmatpush.bf16.msra.mxu0 %v449_v3 }
  0x3e   : > { %441 = vmatmul.msk.bf16.vlgmr.msra.gmra.mxu0 %vm277_vm0, %v448_v4 }
  0xbb   : > { %v290_v5 = vpop.f32.mrf.mxu0 }
  0xbc   : > { %v299_v7 = vmul.f32 %v520_v6, %v290_v5 }
  0xbe   : > { %v305_v11 = vadd.f32 %v521_v8, %v299_v7 }
  0xc3   : > { %v292_v9 = vpop.f32.mrf.mxu0 }
  0xc4   : > { %v300_v10 = vmul.f32 %v520_v6, %v292_v9 }
  0xc6   : > { %v306_v12 = vadd.f32 %v521_v8, %v300_v10 }
  0xc8   : > { %v457_v13 = vpack.c.bf16 %v306_v12, %v305_v11 }
  0xca   : > { %458 = vst [vmem:[%s234_s11] sm:$0xff] %v457_v13  }
  0xcb   : > { %609 = shalt.err (!%p606_p10)
}
  0xcc   : > { %s657_s10 = smov 64   ;;  %s658_s30 = smov 4  }
  0xcd   : > { %465 = dma.vmem_to_hbm [thread:$0]  (%p753_p3), %s325_s13, 128, %s327_s12, %s312_s19, %s657_s10, %s657_s10, %s658_s30  }
  0xce PF: > { %s341_s5 = sand.u32 1, %s640_s15   ;;  %p844_p12 = scmp.ge.s32.totalorder %s652_s18, 2 }
  0xcf   : > { %s342_s23 = scalar_lea.sflag [#allocation4], %s341_s5 }
  0xd0   : > { %p476_p13 = pnand %p844_p12, %p719_p6 }
  0xd2   : > { %p477_p0 = pneg %p476_p13 }
  0xd4   : > { %635 = dma.done.wait (%p477_p0), %s342_s23, 128  }
  0xd5   : > { %637 = vsyncadd (%p477_p0), %s342_s23, 4294967168  ;;  %p18_p5 = scmp.ge.s32.totalorder %s737_s29, 4   ;;  %s845_s15 = smov %s644_s16 }
  0xd6   : > { %s846_s16 = smov %s648_s17  ;;  %s847_s17 = smov %s749_s8 }
  0xd7   : > { %s848_s18 = smov %s737_s29  ;;  %20 = sbr.rel (!%p18_p5) target bundleno = 6 (0x6), region = 85 }
  0xdc   :  { %348 = vsyncpa [#allocation3], 1 }
  0xdd   :  { %350 = vsyncpa [#allocation3 + $0x1], 1 }
  0xde   :  { %351 = vsyncpa [#allocation6], 1 }
  0xdf   :  { %352 = vsyncpa [#allocation4], 1 }
  0xe0   :  { %354 = vsyncpa [#allocation4 + $0x1], 1 }

</bundles_post_ra>
